<compile_context>
chip_gen: v7x
topology: tpu7x:2x2x1
jax: 0.10.0
libtpu: 0.0.40
codegen_flags: <defaults>
</compile_context>

<pallas_src>
import jax
import jax.numpy as jnp
from jax.experimental import pallas as pl
from jax.experimental.pallas import tpu as pltpu


def _round_up(x, m):
    return (x + m - 1) // m * m


def mvregressor_kernel(x_ref, w0_ref, b0_ref, wo_ref, bo_ref, o_ref):
    # dense0: (bm, D_in) @ (D_in, Hp) + (1, Hp); f32 accumulation on the MXU.
    h = jnp.dot(x_ref[...], w0_ref[...], preferred_element_type=jnp.float32)
    # n_layers x (relu ; eval-mode dropout == identity) then a final relu
    # collapses to a single relu (max is idempotent).
    h = jnp.maximum(h + b0_ref[...], 0.0)
    # output: (bm, Hp) @ (Hp, d_out) + (1, d_out); cast h to the weight dtype
    # so the bf16 MXU path is used when weights are bf16 (no-op for f32).
    y = jnp.dot(h.astype(wo_ref.dtype), wo_ref[...],
                preferred_element_type=jnp.float32)
    o_ref[...] = jnp.maximum(y + bo_ref[...], 0.0).astype(o_ref.dtype)


def prepare_params(w0, b0, wo, bo, *, param_dtype=None):
    """One-time parameter prep (hoisted out of the per-forward path).

    w0: (input_dim, H), b0: (H,)/(1,H), wo: (H, output_dim), bo: (output_dim,)/(1,output_dim)
    Weights are stored pre-transposed (in_features, out_features). The hidden
    dim H is zero-padded to a multiple of 128 lanes; zero weight cols/rows and
    zero bias keep padded lanes exactly 0 through ReLU, so results are exact.
    """
    d_in, H = w0.shape
    d_out = wo.shape[1]
    Hp = _round_up(H, 128)
    w_dtype = param_dtype if param_dtype is not None else w0.dtype
    w0p = jnp.zeros((d_in, Hp), w_dtype).at[:, :H].set(w0.astype(w_dtype))
    b0p = jnp.zeros((1, Hp), jnp.float32).at[:, :H].set(
        b0.astype(jnp.float32).reshape(1, H))
    wop = jnp.zeros((Hp, d_out), w_dtype).at[:H, :].set(wo.astype(w_dtype))
    bop = bo.astype(jnp.float32).reshape(1, d_out)
    return w0p, b0p, wop, bop


def mvregressor_forward(x, w0p, b0p, wop, bop, *, n_layers=10, bm=1024,
                        param_dtype=None, out_dtype=None):
    """x: (B, input_dim). w0p/b0p/wop/bop come from prepare_params()."""
    del n_layers  # relu chain + eval-mode dropout reduce to one relu; kept for API fidelity

    B, d_in = x.shape
    Hp = w0p.shape[1]
    d_out = wop.shape[1]

    # out_dtype defaults to the incoming x dtype; with param_dtype=bf16 pass
    # out_dtype=jnp.bfloat16 explicitly to also halve writeback bytes
    # (accumulation stays f32 in-kernel either way).
    out_dtype = out_dtype if out_dtype is not None else x.dtype
    if param_dtype is not None:
        x = x.astype(param_dtype)

    # --- batch tiling: no jnp.pad; Pallas handles the ragged last block ------
    sub = max(8, 32 // jnp.dtype(x.dtype).itemsize)  # 8 for f32, 16 for bf16
    bm_eff = min(bm, _round_up(B, sub))
    n_steps = pl.cdiv(B, bm_eff)
    if n_steps < 2 and B >= 2 * sub:
        # Split a single-step grid so both v7x TensorCores get work
        # (no-op cost on v5e/v6e: one extra tiny grid step).
        bm_eff = _round_up(pl.cdiv(B, 2), sub)
        n_steps = pl.cdiv(B, bm_eff)

    # --- advisory cost estimate (real dims, not padded batch) -----------------
    flops = 2 * B * (d_in * Hp + Hp * d_out)
    bytes_accessed = (
        B * d_in * x.dtype.itemsize
        + B * d_out * jnp.dtype(out_dtype).itemsize
        + w0p.size * w0p.dtype.itemsize
        + wop.size * wop.dtype.itemsize
        + (b0p.size + bop.size) * 4
    )

    return pl.pallas_call(
        mvregressor_kernel,
        out_shape=jax.ShapeDtypeStruct((B, d_out), out_dtype),
        grid_spec=pltpu.PrefetchScalarGridSpec(
            num_scalar_prefetch=0,
            grid=(n_steps,),
            in_specs=[
                pl.BlockSpec((bm_eff, d_in), lambda i: (i, 0)),  # x tile per step
                pl.BlockSpec((d_in, Hp), lambda i: (0, 0)),      # weights resident
                pl.BlockSpec((1, Hp), lambda i: (0, 0)),
                pl.BlockSpec((Hp, d_out), lambda i: (0, 0)),
                pl.BlockSpec((1, d_out), lambda i: (0, 0)),
            ],
            # Unpadded, lane = d_out = full array dim -> legal block; writes only
            # the useful 18 lanes (no post-kernel slice / extra HBM pass).
            out_specs=pl.BlockSpec((bm_eff, d_out), lambda i: (i, 0)),
        ),
        compiler_params=pltpu.CompilerParams(
            dimension_semantics=("parallel",),
        ),
        cost_estimate=pl.CostEstimate(
            flops=flops, transcendentals=0, bytes_accessed=bytes_accessed),
    )(x, w0p, b0p, wop, bop)


def reference_forward(x, w0, b0, wo, bo):
    h = jnp.maximum(x @ w0 + b0.reshape(1, -1), 0.0)
    return jnp.maximum(h @ wo + bo.reshape(1, -1), 0.0)


if __name__ == "__main__":
    # Module defaults: input_dim=28, num_units=50, output_dim=18, n_layers=10
    B, D_IN, H, D_OUT, N_LAYERS = 64, 28, 50, 18, 10

    key = jax.random.PRNGKey(0)
    kx, k0, kb0, ko, kbo = jax.random.split(key, 5)

    # Deterministic PyTorch-style uniform(-1/sqrt(fan_in), 1/sqrt(fan_in)) init.
    lim0 = 1.0 / (D_IN ** 0.5)
    limo = 1.0 / (H ** 0.5)
    x = jax.random.normal(kx, (B, D_IN), dtype=jnp.float32)
    w0 = jax.random.uniform(k0, (D_IN, H), minval=-lim0, maxval=lim0, dtype=jnp.float32)
    b0 = jax.random.uniform(kb0, (1, H), minval=-lim0, maxval=lim0, dtype=jnp.float32)
    wo = jax.random.uniform(ko, (H, D_OUT), minval=-limo, maxval=limo, dtype=jnp.float32)
    bo = jax.random.uniform(kbo, (1, D_OUT), minval=-limo, maxval=limo, dtype=jnp.float32)

    # One-time parameter prep (padding hoisted out of the forward path).
    w0p, b0p, wop, bop = prepare_params(w0, b0, wo, bo)

    out = mvregressor_forward(x, w0p, b0p, wop, bop, n_layers=N_LAYERS, bm=1024)
    out = jax.block_until_ready(out)

    ref = reference_forward(x, w0, b0, wo, bo)
    assert out.shape == (B, D_OUT)
    assert jnp.allclose(out, ref, atol=1e-5, rtol=1e-5), "mismatch vs reference"

    print("KERNEL_OK")
</pallas_src>

<mosaic_0001>
module attributes {stable_mosaic.version = 11 : i64} {
  func.func @mvregressor_kernel(%arg0: i32, %arg1: memref<32x28xf32, #tpu.memory_space<vmem>>, %arg2: memref<28x128xf32, #tpu.memory_space<vmem>>, %arg3: memref<1x128xf32, #tpu.memory_space<vmem>>, %arg4: memref<128x18xf32, #tpu.memory_space<vmem>>, %arg5: memref<1x18xf32, #tpu.memory_space<vmem>>, %arg6: memref<32x18xf32, #tpu.memory_space<vmem>>) attributes {dimension_semantics = [#tpu.dimension_semantics<parallel>], iteration_bounds = array<i64: 2>, scalar_prefetch = 0 : i64, scratch_operands = 0 : i64, tpu.core_type = #tpu.core_type<tc>, window_params = [{transform_indices = @transform_0, window_bounds = array<i64: 32, 28>}, {pipeline_mode = #tpu.pipeline_mode<synchronous>, transform_indices = @transform_1, window_bounds = array<i64: 28, 128>}, {pipeline_mode = #tpu.pipeline_mode<synchronous>, transform_indices = @transform_2, window_bounds = array<i64: 1, 128>}, {pipeline_mode = #tpu.pipeline_mode<synchronous>, transform_indices = @transform_3, window_bounds = array<i64: 128, 18>}, {pipeline_mode = #tpu.pipeline_mode<synchronous>, transform_indices = @transform_4, window_bounds = array<i64: 1, 18>}, {transform_indices = @transform_5, window_bounds = array<i64: 32, 18>}]} {
    %c0 = arith.constant 0 : index
    %c0_0 = arith.constant 0 : index
    %0 = vector.load %arg1[%c0, %c0_0] : memref<32x28xf32, #tpu.memory_space<vmem>>, vector<32x28xf32>
    %c0_1 = arith.constant 0 : index
    %c0_2 = arith.constant 0 : index
    %1 = vector.load %arg2[%c0_1, %c0_2] : memref<28x128xf32, #tpu.memory_space<vmem>>, vector<28x128xf32>
    %cst = arith.constant dense<0.000000e+00> : vector<32x128xf32>
    %2 = tpu.matmul %0, %1, %cst {dimension_numbers = #tpu.dot_dimension_numbers<[1], [0], [0], [1], [0, 0, 1, 1], [], []>} : vector<32x28xf32>, vector<28x128xf32>, vector<32x128xf32> -> vector<32x128xf32>
    %c0_3 = arith.constant 0 : index
    %c0_4 = arith.constant 0 : index
    %3 = vector.load %arg3[%c0_3, %c0_4] : memref<1x128xf32, #tpu.memory_space<vmem>>, vector<1x128xf32>
    %4 = vector.broadcast %3 : vector<1x128xf32> to vector<32x128xf32>
    %5 = arith.addf %2, %4 : vector<32x128xf32>
    %cst_5 = arith.constant 0.000000e+00 : f32
    %6 = vector.broadcast %cst_5 : f32 to vector<32x128xf32>
    %7 = arith.maximumf %5, %6 : vector<32x128xf32>
    %c0_6 = arith.constant 0 : index
    %c0_7 = arith.constant 0 : index
    %8 = vector.load %arg4[%c0_6, %c0_7] : memref<128x18xf32, #tpu.memory_space<vmem>>, vector<128x18xf32>
    %cst_8 = arith.constant dense<0.000000e+00> : vector<32x18xf32>
    %9 = tpu.matmul %7, %8, %cst_8 {dimension_numbers = #tpu.dot_dimension_numbers<[1], [0], [0], [1], [0, 0, 1, 1], [], []>} : vector<32x128xf32>, vector<128x18xf32>, vector<32x18xf32> -> vector<32x18xf32>
    %c0_9 = arith.constant 0 : index
    %c0_10 = arith.constant 0 : index
    %10 = vector.load %arg5[%c0_9, %c0_10] : memref<1x18xf32, #tpu.memory_space<vmem>>, vector<1x18xf32>
    %11 = vector.broadcast %10 : vector<1x18xf32> to vector<32x18xf32>
    %12 = arith.addf %9, %11 : vector<32x18xf32>
    %cst_11 = arith.constant 0.000000e+00 : f32
    %13 = vector.broadcast %cst_11 : f32 to vector<32x18xf32>
    %14 = arith.maximumf %12, %13 : vector<32x18xf32>
    %c0_12 = arith.constant 0 : index
    %c0_13 = arith.constant 0 : index
    %15 = vector.load %arg6[%c0_12, %c0_13] : memref<32x18xf32, #tpu.memory_space<vmem>>, vector<32x18xf32>
    tpu.vector_store %arg6[%c0_12, %c0_13], %14 {strides = array<i32>} : memref<32x18xf32, #tpu.memory_space<vmem>>, vector<32x18xf32>,
    return
  }
  func.func @transform_0(%arg0: i32) -> (i32, i32) {
    %c0_i32 = arith.constant 0 : i32
    %c0_i32_0 = arith.constant 0 : i32
    return %arg0, %c0_i32 : i32, i32
  }
  func.func @transform_1(%arg0: i32) -> (i32, i32) {
    %c0_i32 = arith.constant 0 : i32
    %c0_i32_0 = arith.constant 0 : i32
    %c0_i32_1 = arith.constant 0 : i32
    return %c0_i32, %c0_i32_0 : i32, i32
  }
  func.func @transform_2(%arg0: i32) -> (i32, i32) {
    %c0_i32 = arith.constant 0 : i32
    %c0_i32_0 = arith.constant 0 : i32
    %c0_i32_1 = arith.constant 0 : i32
    return %c0_i32, %c0_i32_0 : i32, i32
  }
  func.func @transform_3(%arg0: i32) -> (i32, i32) {
    %c0_i32 = arith.constant 0 : i32
    %c0_i32_0 = arith.constant 0 : i32
    %c0_i32_1 = arith.constant 0 : i32
    return %c0_i32, %c0_i32_0 : i32, i32
  }
  func.func @transform_4(%arg0: i32) -> (i32, i32) {
    %c0_i32 = arith.constant 0 : i32
    %c0_i32_0 = arith.constant 0 : i32
    %c0_i32_1 = arith.constant 0 : i32
    return %c0_i32, %c0_i32_0 : i32, i32
  }
  func.func @transform_5(%arg0: i32) -> (i32, i32) {
    %c0_i32 = arith.constant 0 : i32
    %c0_i32_0 = arith.constant 0 : i32
    return %arg0, %c0_i32 : i32, i32
  }
}

</mosaic_0001>

<bundles_post_ra>
// kernel: tpu_custom_call.1
= control target key start
LH: loop header
LB: loop body
LE: loop exit
PB: predicated region body
PF: predicated region fallthrough
CT: control target
= control target key end

     0   :  { %s710_s18 = smov 0   ;;  %s812_s0 = inlined_call_operand.vmem [shape: f32[64,28], index: 0, kind: input, shape index: {}]   ;;  %s813_s1 = inlined_call_operand.vmem [shape: f32[28,128], index: 1, kind: input, shape index: {}]   ;;  %s814_s2 = inlined_call_operand.vmem [shape: f32[1,128], index: 2, kind: input, shape index: {}]   ;;  %s815_s3 = inlined_call_operand.vmem [shape: f32[128,18], index: 3, kind: input, shape index: {}]   ;;  %s816_s4 = inlined_call_operand.vmem [shape: f32[1,18], index: 4, kind: input, shape index: {}]   ;;  %s817_s5 = inlined_call_operand.vmem [shape: f32[64,18], index: 5, kind: output, shape index: {}]  }
   0x1 LB: > { %s522_s19 = sadd.s32 4294967295, %s677_s18   ;;  %p526_p0 = scmp.ge.s32.totalorder %s677_s18, 1  ;;  %s677_s18 = sphi %s710_s18, %s15_s18  }
   0x2   : > { %p188_p1 = scmp.lt.s32.totalorder %s677_s18, 3 }
   0x4   : > { %p189_p2 = pnand %p526_p0, %p188_p1 }
   0x5   : > { %v232_v0 = vld [vmem:[%s813_s1] sm:$0xff] (!%p189_p2)  ;;  %v233_v1 = vld [vmem:[%s813_s1 + $0x8] sm:$0xff] (!%p189_p2)  ;;  %v234_v2 = vld [vmem:[%s813_s1 + $0x10] sm:$0xff] (!%p189_p2)  ;;  %vm256_vm0 = vcmask (!%p189_p2), 1043456   ;;  %s527_s26 = sshll.u32 (!%p189_p2), %s522_s19, 2  ;;  %vm679_vm1 = vmmov (!%p189_p2), 1  }
   0x6   : > { %192 = sbr.rel (%p189_p2) target bundleno = 458 (0x1ca), region = 40  ;;  %v620_v3 = vpack.c.bf16 (!%p189_p2), %v233_v1, %v232_v0  ;;  %v235_v4 = vld [vmem:[%s813_s1 + $0x18] sm:$0xf] (!%p189_p2)  ;;  %vm730_vm2 = vmpackc.low (!%p189_p2), %vm256_vm0, %vm679_vm1  ;;  %p217_p3 = scmp.lt.s32.totalorder (!%p189_p2), %s527_s26, 7  ;;  %v349_v6 = vld [vmem:[%s815_s3] sm:$0xff] (!%p189_p2)  ;;  %vm243_vm3 = vcmask (!%p189_p2), 228352  }
   0x7   : > { %v624_v7 = vpack.c.bf16 (!%p189_p2), %v235_v4, %v234_v2  ;;  %v350_v8 = vld [vmem:[%s815_s3 + $0x8] sm:$0xff] (!%p189_p2)  ;;  %v351_v9 = vld [vmem:[%s815_s3 + $0x10] sm:$0xff] (!%p189_p2)  ;;  %v352_v10 = vld [vmem:[%s815_s3 + $0x18] sm:$0xff] (!%p189_p2)  ;;  %vm461_vm4 = vcmask (!%p189_p2), 146432  }
   0x8   : > { %621 = vmatprep.subr.bf16.mxu0 (!%p189_p2), %v620_v3  ;;  %v630_v11 = vpack.c.bf16 (!%p189_p2), %v350_v8, %v349_v6  ;;  %v634_v12 = vpack.c.bf16 (!%p189_p2), %v352_v10, %v351_v9  ;;  %v353_v13 = vld [vmem:[%s815_s3 + $0x20] sm:$0xff] (!%p189_p2)  ;;  %v354_v14 = vld [vmem:[%s815_s3 + $0x28] sm:$0xff] (!%p189_p2)  ;;  %v355_v18 = vld [vmem:[%s815_s3 + $0x30] sm:$0xff] (!%p189_p2) }
   0x9   : > { %623 = vmatpush3.bf16.msra.mxu0 (!%p189_p2), %v620_v3  ;;  %v638_v16 = vpack.c.bf16 (!%p189_p2), %v354_v14, %v353_v13  ;;  %v356_v19 = vld [vmem:[%s815_s3 + $0x38] sm:$0xff] (!%p189_p2)  ;;  %v357_v23 = vld [vmem:[%s815_s3 + $0x40] sm:$0xff] (!%p189_p2)  ;;  %v358_v24 = vld [vmem:[%s815_s3 + $0x48] sm:$0xff] (!%p189_p2) }
   0xa   : > { %626 = vmatprep.subr.msk.bf16.mxu0 (!%p189_p2), %vm730_vm2, %v624_v7  ;;  %631 = vmatprep.subr.bf16.mxu1 (!%p189_p2), %v630_v11  ;;  %v642_v21 = vpack.c.bf16 (!%p189_p2), %v356_v19, %v355_v18  ;;  %v646_v25 = vpack.c.bf16 (!%p189_p2), %v358_v24, %v357_v23  ;;  %v359_v26 = vld [vmem:[%s815_s3 + $0x50] sm:$0xff] (!%p189_p2)  ;;  %v360_v27 = vld [vmem:[%s815_s3 + $0x58] sm:$0xff] (!%p189_p2)  ;;  %v361_v29 = vld [vmem:[%s815_s3 + $0x60] sm:$0xff] (!%p189_p2) }
   0xb   : > { %633 = vmatpush3.bf16.msra.mxu1 (!%p189_p2), %v630_v11  ;;  %v650_v28 = vpack.c.bf16 (!%p189_p2), %v360_v27, %v359_v26  ;;  %v362_v30 = vld [vmem:[%s815_s3 + $0x68] sm:$0xff] (!%p189_p2)  ;;  %v363_v32 = vld [vmem:[%s815_s3 + $0x70] sm:$0xff] (!%p189_p2)  ;;  %v364_v33 = vld [vmem:[%s815_s3 + $0x78] sm:$0xff] (!%p189_p2) }
   0xc   : > { %635 = vmatprep.subr.bf16.mxu1 (!%p189_p2), %v634_v12  ;;  %v654_v31 = vpack.c.bf16 (!%p189_p2), %v362_v30, %v361_v29  ;;  %v658_v34 = vpack.c.bf16 (!%p189_p2), %v364_v33, %v363_v32  ;;  %v531_v35 = vld [vmem:[%s814_s2] ss:$0 sm:$0xff] (!%p189_p2) }
   0xd   : > { %s821_s26 = smov (!%p217_p3, %s527_s26), 7  ;;  %629 = vmatpush3.bf16.msk.msra.mxu0 %vm730_vm2, %v624_v7  ;;  %v537_v48 = vld [vmem:[%s816_s4] ss:$0 sm:$0xff] }
   0xe   : > { %s528_s16 = sshll.u32 %s821_s26, 3 }
   0xf   : > { %s220_s20 = scalar_lea.vmem %s812_s0, %s528_s16  ;;  %637 = vmatpush3.bf16.msra.mxu1 %v634_v12  ;;  %s226_s25 = scalar_lea.vmem %s817_s5, %s528_s16 }
  0x10   : > { %v228_v15 = vld [vmem:[%s220_s20] sm:$0xff]  ;;  %v229_v17 = vld [vmem:[%s220_s20 + $0x8] sm:$0xff]  ;;  %v230_v20 = vld [vmem:[%s220_s20 + $0x10] sm:$0xff]  ;;  %639 = vmatprep.subr.bf16.mxu1 %v638_v16 }
  0x11   : > { %576 = vmatprep.mubr.msk.f32.mxu0 %vm243_vm3, %v228_v15  ;;  %v231_v22 = vld [vmem:[%s220_s20 + $0x18] sm:$0xff] }
  0x12   : > { %577 = vmatmul.mubr.msk.f32.vlgmr.msra.gmra.mrb[0].mxu0 %vm243_vm3, %v229_v17 }
  0x13   : > { %579 = vmatprep.mubr.msk.f32.mxu0 %vm243_vm3, %v230_v20  ;;  %641 = vmatpush3.bf16.msra.mxu1 %v638_v16 }
  0x14   : > { %643 = vmatprep.subr.bf16.mxu1 %v642_v21 }
  0x16   : > { %580 = vmatmul.mubr.msk.f32.gmra.mrb[2].mxu0 %vm243_vm3, %v231_v22 }
  0x17   : > { %645 = vmatpush3.bf16.msra.mxu1 %v642_v21 }
  0x18   : > { %647 = vmatprep.subr.bf16.mxu1 %v646_v25 }
  0x1b   : > { %649 = vmatpush3.bf16.msra.mxu1 %v646_v25 }
  0x1c   : > { %651 = vmatprep.subr.bf16.mxu1 %v650_v28 }
  0x1f   : > { %653 = vmatpush3.bf16.msra.mxu1 %v650_v28 }
  0x20   : > { %655 = vmatprep.subr.bf16.mxu1 %v654_v31 }
  0x23   : > { %657 = vmatpush3.bf16.msra.mxu1 %v654_v31 }
  0x24   : > { %659 = vmatprep.subr.bf16.mxu1 %v658_v34 }
  0x27   : > { %661 = vmatpush3.bf16.msra.mxu1 %v658_v34 }
  0xe5   : > { %v578_v36 = vpop.f32.mrb[0].mxu0 }
  0xe6   : > { %v332_v37 = vadd.f32 %v578_v36, %v531_v35  ;;  %v326_v38 = vpop.f32.mrb[1].mxu0 }
  0xe7   : > { %v327_v39 = vadd.f32 %v531_v35, %v326_v38 }
  0xe8   : > { %v346_v42 = vmax.f32 %v332_v37, 0.0 }
  0xe9   : > { %v581_v40 = vpop.f32.mrb[2].mxu0  ;;  %v345_v41 = vmax.f32 %v327_v39, 0.0 }
  0xea   : > { %v342_v43 = vadd.f32 %v581_v40, %v531_v35  ;;  %v336_v44 = vpop.f32.mrb[3].mxu0 }
  0xeb   : > { %v337_v45 = vadd.f32 %v531_v35, %v336_v44  ;;  %614 = vmatprep.mubr.f32.mxu1 %v345_v41 }
  0xec   : > { %615 = vmatmul.mubr.f32.vlgmr.msra.gmra.mrb[0].mxu1 %v346_v42  ;;  %v348_v47 = vmax.f32 %v342_v43, 0.0 }
  0xed   : > { %v347_v46 = vmax.f32 %v337_v45, 0.0 }
  0xef   : > { %617 = vmatprep.mubr.f32.mxu1 %v347_v46 }
  0xf0   : > { %618 = vmatmul.mubr.f32.gmra.mrb[2].mxu1 %v348_v47 }
 0x1bf   : > { %v616_v49 = vpop.f32.mrb[0].mxu1 }
 0x1c0   : > { %v444_v50 = vadd.f32 %v616_v49, %v537_v48  ;;  %v438_v51 = vpop.f32.mrb[1].mxu1 }
 0x1c1   : > { %v439_v52 = vadd.f32 %v537_v48, %v438_v51 }
 0x1c2   : > { %v458_v55 = vmax.f32 %v444_v50, 0.0 }
 0x1c3   : > { %v457_v53 = vmax.f32 %v439_v52, 0.0  ;;  %v619_v54 = vpop.f32.mrb[2].mxu1 }
 0x1c4   : > { %v454_v56 = vadd.f32 %v619_v54, %v537_v48  ;;  %v448_v57 = vpop.f32.mrb[3].mxu1  ;;  %463 = vst.msk [vmem:[%s226_s25 + $0x8] sm:$0xff] %vm461_vm4, %v458_v55 }
 0x1c5   : > { %462 = vst.msk [vmem:[%s226_s25] sm:$0xff] %vm461_vm4, %v457_v53  ;;  %v449_v58 = vadd.f32 %v537_v48, %v448_v57 }
 0x1c6   : > { %v460_v60 = vmax.f32 %v454_v56, 0.0 }
 0x1c7   : > { %v459_v59 = vmax.f32 %v449_v58, 0.0 }
 0x1c8   : > { %465 = vst.msk [vmem:[%s226_s25 + $0x18] sm:$0xff] %vm461_vm4, %v460_v60 }
 0x1c9   : > { %464 = vst.msk [vmem:[%s226_s25 + $0x10] sm:$0xff] %vm461_vm4, %v459_v59 }
 0x1ca PF: > { %s15_s18 = sadd.s32 1, %s677_s18  }
 0x1cb   : > { %p12_p4 = scmp.ge.s32.totalorder %s15_s18, 4  }
 0x1cd   :  { %14 = sbr.rel (!%p12_p4) target bundleno = 1 (0x1), region = 70 }

</bundles_post_ra>
